<compile_context>
chip_gen: v5e
topology: v5e:2x2
jax: 0.10.0
libtpu: 0.0.40
codegen_flags: <defaults>
</compile_context>

<pallas_src>
import jax
import jax.numpy as jnp
from jax.experimental import pallas as pl
from jax.experimental.pallas import tpu as pltpu


def _affine_kernel(params_ref, x_ref, o_ref):
    # params_ref: (2,) f32 in SMEM = [w, b]; x_ref / o_ref: (tile_rows, lane) in VMEM.
    w = params_ref[0]
    b = params_ref[1]
    x = x_ref[...].astype(jnp.float32)          # upcast per tile (no-op for f32 input)
    o_ref[...] = (x * w + b).astype(o_ref.dtype)  # elementwise VPU FMA


def linear_regression_forward(
    x: jax.Array,
    weight: jax.Array,
    bias: jax.Array,
    *,
    lane: int = 1024,       # multiple of 128 (vreg lane width)
    tile_rows: int = 1024,  # max rows per tile (multiple of 8)
) -> jax.Array:
    """Forward pass of Linear(in_features=1, out_features=1, bias=True).

    x:      (..., 1) array (any leading batch shape)
    weight: (1, 1) float32
    bias:   (1,)   float32
    returns same shape and dtype as x
    """
    orig_shape = x.shape
    dtype = x.dtype
    n = x.size

    w = weight.reshape(()).astype(jnp.float32)
    b = bias.reshape(()).astype(jnp.float32)

    n_bulk = (n // lane) * lane
    if n_bulk == 0:
        # Tiny or empty input: a standalone kernel cannot beat fused XLA here.
        return (x.astype(jnp.float32) * w + b).astype(dtype).reshape(orig_shape)

    params = jnp.stack([w, b])  # (2,) f32 -> SMEM scalars

    x_flat = x.reshape(-1)
    rows = n_bulk // lane
    x2d = (x_flat if n_bulk == n else x_flat[:n_bulk]).reshape(rows, lane)

    # Tile rows: multiple of 8 (or the full row count), sized so mid-sized inputs
    # still get >= ~4 grid steps (v7x 2-TC sharding) while large inputs use
    # ~4 MiB/buffer tiles.
    if rows < 8:
        tr = rows                                      # full first dim (allowed)
    else:
        tr = min(tile_rows, max(8, 8 * pl.cdiv(rows, 32)))
    grid = (pl.cdiv(rows, tr),)

    itemsize = x.dtype.itemsize
    y2d = pl.pallas_call(
        _affine_kernel,
        out_shape=jax.ShapeDtypeStruct((rows, lane), dtype),
        grid=grid,
        in_specs=[
            pl.BlockSpec(memory_space=pltpu.MemorySpace.SMEM),  # params (2,) scalars
            pl.BlockSpec((tr, lane), lambda i: (i, 0)),         # x tile
        ],
        out_specs=pl.BlockSpec((tr, lane), lambda i: (i, 0)),
        compiler_params=pltpu.CompilerParams(
            dimension_semantics=("parallel",),      # shard grid across TCs on v7x
            vmem_limit_bytes=32 * 1024 * 1024,      # covers 16 MiB footprint everywhere
        ),
        cost_estimate=pl.CostEstimate(
            flops=2 * n_bulk,
            transcendentals=0,
            bytes_accessed=2 * n_bulk * itemsize + 8,
        ),
    )(params, x2d)

    y_bulk = y2d.reshape(-1)
    if n_bulk == n:
        return y_bulk.reshape(orig_shape)

    # Sub-lane-width tail (< `lane` elements): cheaper as fused XLA than any padding.
    tail = x_flat[n_bulk:]
    y_tail = (tail.astype(jnp.float32) * w + b).astype(dtype)
    return jnp.concatenate([y_bulk, y_tail]).reshape(orig_shape)


if __name__ == "__main__":
    key = jax.random.PRNGKey(0)
    k_w, k_b, k1, k2, k3 = jax.random.split(key, 5)

    # torch.nn.Linear(1, 1) init: uniform(-bound, bound), bound = 1/sqrt(in_features) = 1
    weight = jax.random.uniform(k_w, (1, 1), jnp.float32, -1.0, 1.0)
    bias = jax.random.uniform(k_b, (1,), jnp.float32, -1.0, 1.0)

    fwd = jax.jit(linear_regression_forward)

    def check(x):
        y = jax.block_until_ready(fwd(x, weight, bias))
        y_ref = x @ weight.T + bias
        assert y.shape == x.shape and y.dtype == x.dtype
        assert jnp.allclose(y, y_ref, atol=1e-6, rtol=1e-6), float(
            jnp.max(jnp.abs(y - y_ref))
        )

    # 1) lane-aligned batch -> pure kernel path (no pad / slice / concat)
    check(jax.random.normal(k1, (4096, 1), jnp.float32))
    # 2) multi-step grid with a masked partial edge block + small XLA tail
    check(jax.random.normal(k2, (1024 * 100 + 500, 1), jnp.float32))
    # 3) tiny batch (module's typical demo size) -> plain XLA fallback
    check(jax.random.normal(k3, (8, 1), jnp.float32))

    print("KERNEL_OK")
</pallas_src>

<mosaic_0001>
module attributes {stable_mosaic.version = 11 : i64} {
  func.func @_affine_kernel(%arg0: i32, %arg1: memref<2xf32, #tpu.memory_space<smem>>, %arg2: memref<4x1024xf32, #tpu.memory_space<vmem>>, %arg3: memref<4x1024xf32, #tpu.memory_space<vmem>>) attributes {dimension_semantics = [#tpu.dimension_semantics<parallel>], iteration_bounds = array<i64: 1>, scalar_prefetch = 0 : i64, scratch_operands = 0 : i64, tpu.core_type = #tpu.core_type<tc>, window_params = [{transform_indices = @transform_0, window_bounds = array<i64: 2>}, {transform_indices = @transform_1, window_bounds = array<i64: 4, 1024>}, {transform_indices = @transform_2, window_bounds = array<i64: 4, 1024>}]} {
    %c0 = arith.constant 0 : index
    %0 = memref.load %arg1[%c0] : memref<2xf32, #tpu.memory_space<smem>>
    %c1 = arith.constant 1 : index
    %1 = memref.load %arg1[%c1] : memref<2xf32, #tpu.memory_space<smem>>
    %c0_0 = arith.constant 0 : index
    %c0_1 = arith.constant 0 : index
    %2 = vector.load %arg2[%c0_0, %c0_1] : memref<4x1024xf32, #tpu.memory_space<vmem>>, vector<4x1024xf32>
    %3 = vector.broadcast %0 : f32 to vector<4x1024xf32>
    %4 = arith.mulf %2, %3 : vector<4x1024xf32>
    %5 = vector.broadcast %1 : f32 to vector<4x1024xf32>
    %6 = arith.addf %4, %5 : vector<4x1024xf32>
    %c0_2 = arith.constant 0 : index
    %c0_3 = arith.constant 0 : index
    %7 = vector.load %arg3[%c0_2, %c0_3] : memref<4x1024xf32, #tpu.memory_space<vmem>>, vector<4x1024xf32>
    tpu.vector_store %arg3[%c0_2, %c0_3], %6 {strides = array<i32>} : memref<4x1024xf32, #tpu.memory_space<vmem>>, vector<4x1024xf32>,
    return
  }
  func.func @transform_0(%arg0: i32) -> i32 {
    %c0_i32 = arith.constant 0 : i32
    %c0_i32_0 = arith.constant 0 : i32
    return %c0_i32 : i32
  }
  func.func @transform_1(%arg0: i32) -> (i32, i32) {
    %c0_i32 = arith.constant 0 : i32
    %c0_i32_0 = arith.constant 0 : i32
    return %arg0, %c0_i32 : i32, i32
  }
  func.func @transform_2(%arg0: i32) -> (i32, i32) {
    %c0_i32 = arith.constant 0 : i32
    %c0_i32_0 = arith.constant 0 : i32
    return %arg0, %c0_i32 : i32, i32
  }
}

</mosaic_0001>

<bundles_post_ra>
// kernel: linear_regression_forward.1
= control target key start
LH: loop header
LB: loop body
LE: loop exit
PB: predicated region body
PF: predicated region fallthrough
CT: control target
= control target key end

     0   :  { %7 = vsyncpa [#allocation3], 0  ;;  %s65_s12 = smov [#allocation2]   ;;  %s108_s0 = inlined_call_operand.vmem [shape: f32[2], index: 0, kind: input, shape index: {}]   ;;  %s109_s1 = inlined_call_operand.vmem [shape: f32[4,1024], index: 1, kind: input, shape index: {}]   ;;  %s110_s2 = inlined_call_operand.vmem [shape: f32[4,1024], index: 2, kind: output, shape index: {}]  }
   0x1   :  { %s13_s11 = sshll.u32 %s108_s0, 4  ;;  %s14_s11 = int_to_ptr.vmem [resolvable:$true] %s13_s11 }
   0x2   :  { %16 = dma.vmem_to_smem %s14_s11, 16, %s65_s12, [#allocation3]  }
   0x3   :  { %63 = dma.done.wait [#allocation3], 16  }
   0x4   :  { %64 = vsyncadd [#allocation3], 4294967280 }
   0x5   :  { %23 = sfence }
   0x6   :  { %s24_s13 = sld [smem:[#allocation2]]  ;;  %v26_v0 = vld [vmem:[%s109_s1] sm:$0xff]  ;;  %v27_v1 = vld [vmem:[%s109_s1 + $0x8] sm:$0xff]  ;;  %v28_v2 = vld [vmem:[%s109_s1 + $0x10] sm:$0xff] }
   0x7   :  { %s49_s14 = sld [smem:[#allocation2 + $0x1]]  ;;  %v29_v3 = vld [vmem:[%s109_s1 + $0x18] sm:$0xff] }
   0xc   :  { %v30_v4 = vstv %s24_s13 }
   0xd   :  { %v31_v5 = vmul.f32 %v30_v4, %v26_v0  ;;  %v35_v6 = vstv %s49_s14  ;;  %v32_v7 = vmul.f32 %v30_v4, %v27_v1  ;;  %v33_v8 = vmul.f32 %v30_v4, %v28_v2 }
   0xe   :  { %v34_v9 = vmul.f32 %v30_v4, %v29_v3 }
   0xf   :  { %v36_v10 = vadd.f32 %v35_v6, %v31_v5  ;;  %v37_v11 = vadd.f32 %v35_v6, %v32_v7  ;;  %v38_v12 = vadd.f32 %v35_v6, %v33_v8 }
  0x10   :  { %v39_v13 = vadd.f32 %v35_v6, %v34_v9 }
  0x11   :  { %40 = vst [vmem:[%s110_s2] sm:$0xff] %v36_v10 }
  0x12   :  { %41 = vst [vmem:[%s110_s2 + $0x8] sm:$0xff] %v37_v11 }
  0x13   :  { %42 = vst [vmem:[%s110_s2 + $0x10] sm:$0xff] %v38_v12 }
  0x14   :  { %43 = vst [vmem:[%s110_s2 + $0x18] sm:$0xff] %v39_v13 }
  0x15   :  { %48 = vsyncpa [#allocation3], 1 }

</bundles_post_ra>
